<compile_context>
chip_gen: v5e
topology: v5e:2x2
jax: 0.10.0
libtpu: 0.0.40
codegen_flags: <defaults>
</compile_context>

<pallas_src>
import jax
import jax.numpy as jnp
from jax.experimental import pallas as pl
from jax.experimental.pallas import tpu as pltpu

# ----- model hyper-parameters (small, consistent with the module) -----------
BATCH = 2
SEQ = 8
D_MODEL = 32
NUM_HEADS = 4
D_FF = 64
D_K = D_MODEL // NUM_HEADS
EPS = 1e-6
LANES = 128


def _layernorm(x, gamma, beta):
    """Matches the module's LayerNorm: unbiased std (ddof=1), eps added to std."""
    mean = jnp.mean(x, axis=-1, keepdims=True)
    var = jnp.sum((x - mean) ** 2, axis=-1, keepdims=True) * (1.0 / (x.shape[-1] - 1))
    inv = pl.reciprocal(jnp.sqrt(var) + EPS, approx=False)
    return gamma * (x - mean) * inv + beta


def encoder_layer_kernel(x_ref, wqkv_ref, wo_ref, w12_ref, p_ref, out_ref, attn_ref):
    # Single gridless invocation: whole (B*S, D) activation block lives in VMEM.
    x = x_ref[...]                                          # (16, 32) f32
    p = p_ref[...]                                          # (8, 128) packed small params

    bqkv = p[0:1, 0:3 * D_MODEL]                            # (1, 96)
    bo   = p[1:2, 0:D_MODEL]                                # (1, 32)
    b1   = p[2:3, 0:D_FF]                                   # (1, 64)
    b2   = p[3:4, 0:D_MODEL]
    g1   = p[4:5, 0:D_MODEL]
    be1  = p[5:6, 0:D_MODEL]
    g2   = p[6:7, 0:D_MODEL]
    be2  = p[7:8, 0:D_MODEL]

    scale = jnp.float32(1.0 / (D_K ** 0.5))

    # --- fused QKV projection: one lane-dense (32, 128) MXU pass ---
    qkv = jnp.dot(x, wqkv_ref[...], preferred_element_type=jnp.float32)  # (16, 128)
    qkv = qkv[:, 0:3 * D_MODEL] + bqkv                                   # (16, 96)

    q = qkv[:, 0:D_MODEL] * scale              # 1/sqrt(d_k) folded into q
    k = qkv[:, D_MODEL:2 * D_MODEL]
    v = qkv[:, 2 * D_MODEL:3 * D_MODEL]

    def to_heads(t):
        # (B*S, H*d_k) -> (H*B, S, d_k): static lane slices, tile-aligned reshapes,
        # concat along the untiled major axis (free).
        return jnp.concatenate(
            [t[:, h * D_K:(h + 1) * D_K].reshape(BATCH, SEQ, D_K)
             for h in range(NUM_HEADS)], axis=0)

    qh, kh, vh = to_heads(q), to_heads(k), to_heads(v)      # each (8, 8, 8)

    # --- batched attention over H*B (single score einsum, single softmax,
    #     single context einsum) ---
    s = jnp.einsum("nqd,nkd->nqk", qh, kh, preferred_element_type=jnp.float32)
    s = s - jnp.max(s, axis=-1, keepdims=True)              # stable softmax
    e = jnp.exp(s)
    w = e * pl.reciprocal(jnp.sum(e, axis=-1, keepdims=True), approx=False)
    ctx = jnp.einsum("nqk,nkd->nqd", w, vh, preferred_element_type=jnp.float32)

    def from_heads(t):
        # (H*B, S, L) -> (B*S, H*L): per-head lane concat (XLU slot otherwise idle).
        t4 = t.reshape(NUM_HEADS, BATCH, SEQ, t.shape[-1])
        return jnp.concatenate(
            [t4[h].reshape(BATCH * SEQ, t.shape[-1]) for h in range(NUM_HEADS)],
            axis=-1)

    # lane-dense attention-weight store: (B*S, H*S) = (16, 32)
    attn_ref[...] = from_heads(w).astype(attn_ref.dtype)

    # --- output projection: single matmul with the original (32, 32) wo ---
    ctx2d = from_heads(ctx)                                 # (16, 32), lanes ordered (h, d)
    attn_out = jnp.dot(ctx2d, wo_ref[...], preferred_element_type=jnp.float32) + bo

    # dropout1: identity (eval mode)
    x1 = _layernorm(x + attn_out, g1, be1)

    # --- position-wise FFN (weights packed in one (96, 64) buffer) ---
    w1 = w12_ref[0:D_MODEL, :]                              # (32, 64)
    w2 = w12_ref[D_MODEL:D_MODEL + D_FF, 0:D_MODEL]         # (64, 32)
    h1 = jnp.maximum(jnp.dot(x1, w1, preferred_element_type=jnp.float32) + b1, 0.0)
    ff = jnp.dot(h1, w2, preferred_element_type=jnp.float32) + b2

    # dropout2: identity (eval mode)
    x2 = _layernorm(x1 + ff, g2, be2)
    out_ref[...] = x2.astype(out_ref.dtype)


def encoder_layer_pallas(x, params):
    B, S, D = x.shape

    # ------ wrapper-side layout plumbing (cheap XLA ops on tiny arrays) ------
    x2d = x.reshape(B * S, D)

    # Fused, lane-dense QKV weight, zero-padded to exactly 128 lanes.
    wqkv = jnp.concatenate([params["wq"], params["wk"], params["wv"]], axis=1)  # (32, 96)
    wqkv = jnp.pad(wqkv, ((0, 0), (0, LANES - 3 * D)))                          # (32, 128)

    # FFN weights packed into one buffer: rows 0:32 = w1, rows 32:96 cols 0:32 = w2.
    w2p = jnp.pad(params["w2"], ((0, 0), (0, D_FF - D)))                        # (64, 64)
    w12 = jnp.concatenate([params["w1"], w2p], axis=0)                          # (96, 64)

    # All small vectors packed into one (8, 128) slab (one vreg tile).
    def row(v):
        v = v.reshape(1, -1)
        return jnp.pad(v, ((0, 0), (0, LANES - v.shape[1])))

    bqkv = jnp.concatenate([params["bq"], params["bk"], params["bv"]], axis=1)  # (1, 96)
    p = jnp.concatenate(
        [row(bqkv), row(params["bo"]), row(params["b1"]), row(params["b2"]),
         row(params["gamma1"]), row(params["beta1"]),
         row(params["gamma2"]), row(params["beta2"])], axis=0)                  # (8, 128)

    vmem = pl.BlockSpec(memory_space=pltpu.MemorySpace.VMEM)

    out2d, attn2d = pl.pallas_call(
        encoder_layer_kernel,
        out_shape=[
            jax.ShapeDtypeStruct((B * S, D), jnp.float32),
            jax.ShapeDtypeStruct((B * S, NUM_HEADS * S), jnp.float32),
        ],
        in_specs=[vmem] * 5,
        out_specs=[vmem, vmem],
    )(x2d, wqkv, params["wo"], w12, p)

    out = out2d.reshape(B, S, D)
    # (B*S, H*S) -> (B, S, H, S) -> (B, H, S, S): free XLA layout plumbing.
    attn = attn2d.reshape(B, S, NUM_HEADS, S).transpose(0, 2, 1, 3)
    return out, attn


# ----------------------- pure-JAX reference (for checking) ------------------
def encoder_layer_ref(x, p):
    def ln(x, g, b):
        mean = jnp.mean(x, axis=-1, keepdims=True)
        var = jnp.sum((x - mean) ** 2, axis=-1, keepdims=True) / (x.shape[-1] - 1)
        return g * (x - mean) / (jnp.sqrt(var) + EPS) + b

    B, S, D = x.shape
    q = x @ p["wq"] + p["bq"]
    k = x @ p["wk"] + p["bk"]
    v = x @ p["wv"] + p["bv"]
    rs = lambda t: t.reshape(B, S, NUM_HEADS, D_K).transpose(0, 2, 1, 3)
    qh, kh, vh = rs(q), rs(k), rs(v)
    scores = jnp.einsum("bhqd,bhkd->bhqk", qh, kh) / jnp.sqrt(jnp.float32(D_K))
    w = jax.nn.softmax(scores, axis=-1)
    ao = jnp.einsum("bhqk,bhkd->bhqd", w, vh).transpose(0, 2, 1, 3).reshape(B, S, D)
    ao = ao @ p["wo"] + p["bo"]
    x1 = ln(x + ao, p["gamma1"], p["beta1"])
    ff = jnp.maximum(x1 @ p["w1"] + p["b1"], 0.0) @ p["w2"] + p["b2"]
    x2 = ln(x1 + ff, p["gamma2"], p["beta2"])
    return x2, w


def init_params(key):
    ks = jax.random.split(key, 6)
    s = 0.1
    return {
        "wq": s * jax.random.normal(ks[0], (D_MODEL, D_MODEL), jnp.float32),
        "wk": s * jax.random.normal(ks[1], (D_MODEL, D_MODEL), jnp.float32),
        "wv": s * jax.random.normal(ks[2], (D_MODEL, D_MODEL), jnp.float32),
        "wo": s * jax.random.normal(ks[3], (D_MODEL, D_MODEL), jnp.float32),
        "w1": s * jax.random.normal(ks[4], (D_MODEL, D_FF), jnp.float32),
        "w2": s * jax.random.normal(ks[5], (D_FF, D_MODEL), jnp.float32),
        "bq": jnp.zeros((1, D_MODEL), jnp.float32),
        "bk": jnp.full((1, D_MODEL), 0.01, jnp.float32),
        "bv": jnp.full((1, D_MODEL), -0.01, jnp.float32),
        "bo": jnp.zeros((1, D_MODEL), jnp.float32),
        "b1": jnp.full((1, D_FF), 0.02, jnp.float32),
        "b2": jnp.zeros((1, D_MODEL), jnp.float32),
        "gamma1": jnp.ones((1, D_MODEL), jnp.float32),
        "beta1": jnp.zeros((1, D_MODEL), jnp.float32),
        "gamma2": jnp.ones((1, D_MODEL), jnp.float32),
        "beta2": jnp.zeros((1, D_MODEL), jnp.float32),
    }


if __name__ == "__main__":
    key = jax.random.PRNGKey(0)
    kx, kp = jax.random.split(key)
    x = jax.random.normal(kx, (BATCH, SEQ, D_MODEL), jnp.float32)
    params = init_params(kp)

    out, attn_w = encoder_layer_pallas(x, params)
    out = jax.block_until_ready(out)
    attn_w = jax.block_until_ready(attn_w)

    ref_out, ref_w = encoder_layer_ref(x, params)
    assert out.shape == (BATCH, SEQ, D_MODEL)
    assert attn_w.shape == (BATCH, NUM_HEADS, SEQ, SEQ)
    assert jnp.allclose(out, ref_out, atol=1e-4, rtol=1e-4)
    assert jnp.allclose(attn_w, ref_w, atol=1e-5, rtol=1e-5)

    print("KERNEL_OK")
</pallas_src>

<mosaic_0001>
module attributes {stable_mosaic.version = 11 : i64} {
  func.func @encoder_layer_kernel(%arg0: memref<16x32xf32, #tpu.memory_space<vmem>>, %arg1: memref<32x128xf32, #tpu.memory_space<vmem>>, %arg2: memref<32x32xf32, #tpu.memory_space<vmem>>, %arg3: memref<96x64xf32, #tpu.memory_space<vmem>>, %arg4: memref<8x128xf32, #tpu.memory_space<vmem>>, %arg5: memref<16x32xf32, #tpu.memory_space<vmem>>, %arg6: memref<16x32xf32, #tpu.memory_space<vmem>>) attributes {dimension_semantics = [], scalar_prefetch = 0 : i64, scratch_operands = 0 : i64, tpu.core_type = #tpu.core_type<tc>} {
    %c0 = arith.constant 0 : index
    %c0_0 = arith.constant 0 : index
    %0 = vector.load %arg0[%c0, %c0_0] : memref<16x32xf32, #tpu.memory_space<vmem>>, vector<16x32xf32>
    %c0_1 = arith.constant 0 : index
    %c0_2 = arith.constant 0 : index
    %1 = vector.load %arg4[%c0_1, %c0_2] : memref<8x128xf32, #tpu.memory_space<vmem>>, vector<8x128xf32>
    %2 = vector.extract_strided_slice %1 {offsets = [0, 0], sizes = [1, 96], strides = [1, 1]} : vector<8x128xf32> to vector<1x96xf32>
    %3 = vector.extract_strided_slice %1 {offsets = [1, 0], sizes = [1, 32], strides = [1, 1]} : vector<8x128xf32> to vector<1x32xf32>
    %4 = vector.extract_strided_slice %1 {offsets = [2, 0], sizes = [1, 64], strides = [1, 1]} : vector<8x128xf32> to vector<1x64xf32>
    %5 = vector.extract_strided_slice %1 {offsets = [3, 0], sizes = [1, 32], strides = [1, 1]} : vector<8x128xf32> to vector<1x32xf32>
    %6 = vector.extract_strided_slice %1 {offsets = [4, 0], sizes = [1, 32], strides = [1, 1]} : vector<8x128xf32> to vector<1x32xf32>
    %7 = vector.extract_strided_slice %1 {offsets = [5, 0], sizes = [1, 32], strides = [1, 1]} : vector<8x128xf32> to vector<1x32xf32>
    %8 = vector.extract_strided_slice %1 {offsets = [6, 0], sizes = [1, 32], strides = [1, 1]} : vector<8x128xf32> to vector<1x32xf32>
    %9 = vector.extract_strided_slice %1 {offsets = [7, 0], sizes = [1, 32], strides = [1, 1]} : vector<8x128xf32> to vector<1x32xf32>
    %c0_3 = arith.constant 0 : index
    %c0_4 = arith.constant 0 : index
    %10 = vector.load %arg1[%c0_3, %c0_4] : memref<32x128xf32, #tpu.memory_space<vmem>>, vector<32x128xf32>
    %cst = arith.constant dense<0.000000e+00> : vector<16x128xf32>
    %11 = tpu.matmul %0, %10, %cst {dimension_numbers = #tpu.dot_dimension_numbers<[1], [0], [0], [1], [0, 0, 1, 1], [], []>} : vector<16x32xf32>, vector<32x128xf32>, vector<16x128xf32> -> vector<16x128xf32>
    %12 = vector.extract_strided_slice %11 {offsets = [0, 0], sizes = [16, 96], strides = [1, 1]} : vector<16x128xf32> to vector<16x96xf32>
    %13 = vector.broadcast %2 : vector<1x96xf32> to vector<16x96xf32>
    %14 = arith.addf %12, %13 : vector<16x96xf32>
    %15 = vector.extract_strided_slice %14 {offsets = [0, 0], sizes = [16, 32], strides = [1, 1]} : vector<16x96xf32> to vector<16x32xf32>
    %cst_5 = arith.constant 0.353553385 : f32
    %16 = vector.broadcast %cst_5 : f32 to vector<16x32xf32>
    %17 = arith.mulf %15, %16 : vector<16x32xf32>
    %18 = vector.extract_strided_slice %14 {offsets = [0, 32], sizes = [16, 32], strides = [1, 1]} : vector<16x96xf32> to vector<16x32xf32>
    %19 = vector.extract_strided_slice %14 {offsets = [0, 64], sizes = [16, 32], strides = [1, 1]} : vector<16x96xf32> to vector<16x32xf32>
    %20 = vector.extract_strided_slice %17 {offsets = [0, 0], sizes = [16, 8], strides = [1, 1]} : vector<16x32xf32> to vector<16x8xf32>
    %21 = vector.shape_cast %20 : vector<16x8xf32> to vector<2x8x8xf32>
    %22 = vector.extract_strided_slice %17 {offsets = [0, 8], sizes = [16, 8], strides = [1, 1]} : vector<16x32xf32> to vector<16x8xf32>
    %23 = vector.shape_cast %22 : vector<16x8xf32> to vector<2x8x8xf32>
    %24 = vector.extract_strided_slice %17 {offsets = [0, 16], sizes = [16, 8], strides = [1, 1]} : vector<16x32xf32> to vector<16x8xf32>
    %25 = vector.shape_cast %24 : vector<16x8xf32> to vector<2x8x8xf32>
    %26 = vector.extract_strided_slice %17 {offsets = [0, 24], sizes = [16, 8], strides = [1, 1]} : vector<16x32xf32> to vector<16x8xf32>
    %27 = vector.shape_cast %26 : vector<16x8xf32> to vector<2x8x8xf32>
    %28 = tpu.concatenate %21, %23, %25, %27 in 0 : vector<2x8x8xf32>, vector<2x8x8xf32>, vector<2x8x8xf32>, vector<2x8x8xf32> -> vector<8x8x8xf32>
    %29 = vector.extract_strided_slice %18 {offsets = [0, 0], sizes = [16, 8], strides = [1, 1]} : vector<16x32xf32> to vector<16x8xf32>
    %30 = vector.shape_cast %29 : vector<16x8xf32> to vector<2x8x8xf32>
    %31 = vector.extract_strided_slice %18 {offsets = [0, 8], sizes = [16, 8], strides = [1, 1]} : vector<16x32xf32> to vector<16x8xf32>
    %32 = vector.shape_cast %31 : vector<16x8xf32> to vector<2x8x8xf32>
    %33 = vector.extract_strided_slice %18 {offsets = [0, 16], sizes = [16, 8], strides = [1, 1]} : vector<16x32xf32> to vector<16x8xf32>
    %34 = vector.shape_cast %33 : vector<16x8xf32> to vector<2x8x8xf32>
    %35 = vector.extract_strided_slice %18 {offsets = [0, 24], sizes = [16, 8], strides = [1, 1]} : vector<16x32xf32> to vector<16x8xf32>
    %36 = vector.shape_cast %35 : vector<16x8xf32> to vector<2x8x8xf32>
    %37 = tpu.concatenate %30, %32, %34, %36 in 0 : vector<2x8x8xf32>, vector<2x8x8xf32>, vector<2x8x8xf32>, vector<2x8x8xf32> -> vector<8x8x8xf32>
    %38 = vector.extract_strided_slice %19 {offsets = [0, 0], sizes = [16, 8], strides = [1, 1]} : vector<16x32xf32> to vector<16x8xf32>
    %39 = vector.shape_cast %38 : vector<16x8xf32> to vector<2x8x8xf32>
    %40 = vector.extract_strided_slice %19 {offsets = [0, 8], sizes = [16, 8], strides = [1, 1]} : vector<16x32xf32> to vector<16x8xf32>
    %41 = vector.shape_cast %40 : vector<16x8xf32> to vector<2x8x8xf32>
    %42 = vector.extract_strided_slice %19 {offsets = [0, 16], sizes = [16, 8], strides = [1, 1]} : vector<16x32xf32> to vector<16x8xf32>
    %43 = vector.shape_cast %42 : vector<16x8xf32> to vector<2x8x8xf32>
    %44 = vector.extract_strided_slice %19 {offsets = [0, 24], sizes = [16, 8], strides = [1, 1]} : vector<16x32xf32> to vector<16x8xf32>
    %45 = vector.shape_cast %44 : vector<16x8xf32> to vector<2x8x8xf32>
    %46 = tpu.concatenate %39, %41, %43, %45 in 0 : vector<2x8x8xf32>, vector<2x8x8xf32>, vector<2x8x8xf32>, vector<2x8x8xf32> -> vector<8x8x8xf32>
    "tpu.trace_start"() <{level = 10 : i32, message = "nqd,nkd->nqk"}> : () -> ()
    %cst_6 = arith.constant dense<0.000000e+00> : vector<8x8x8xf32>
    %47 = tpu.matmul %28, %37, %cst_6 {dimension_numbers = #tpu.dot_dimension_numbers<[2], [2], [1], [1], [0, 0, 0, 1, 1, 1], [0], [0]>} : vector<8x8x8xf32>, vector<8x8x8xf32>, vector<8x8x8xf32> -> vector<8x8x8xf32>
    "tpu.trace_stop"() : () -> ()
    %cst_7 = arith.constant dense<0xFF800000> : vector<8x8xf32>
    %48 = vector.multi_reduction <maximumf>, %47, %cst_7 [2] : vector<8x8x8xf32> to vector<8x8xf32>
    %49 = vector.shape_cast %48 : vector<8x8xf32> to vector<8x8x1xf32>
    %50 = vector.broadcast %49 : vector<8x8x1xf32> to vector<8x8x8xf32>
    %51 = arith.subf %47, %50 : vector<8x8x8xf32>
    %52 = math.exp %51 : vector<8x8x8xf32>
    %cst_8 = arith.constant dense<0.000000e+00> : vector<8x8xf32>
    %53 = vector.multi_reduction <add>, %52, %cst_8 [2] : vector<8x8x8xf32> to vector<8x8xf32>
    %54 = vector.shape_cast %53 : vector<8x8xf32> to vector<8x8x1xf32>
    %55 = tpu.reciprocal %54 : vector<8x8x1xf32> -> vector<8x8x1xf32>
    %56 = vector.broadcast %55 : vector<8x8x1xf32> to vector<8x8x8xf32>
    %57 = arith.mulf %52, %56 : vector<8x8x8xf32>
    "tpu.trace_start"() <{level = 10 : i32, message = "nqk,nkd->nqd"}> : () -> ()
    %cst_9 = arith.constant dense<0.000000e+00> : vector<8x8x8xf32>
    %58 = tpu.matmul %57, %46, %cst_9 {dimension_numbers = #tpu.dot_dimension_numbers<[2], [1], [1], [2], [0, 0, 0, 1, 1, 2], [0], [0]>} : vector<8x8x8xf32>, vector<8x8x8xf32>, vector<8x8x8xf32> -> vector<8x8x8xf32>
    "tpu.trace_stop"() : () -> ()
    %59 = vector.shape_cast %57 : vector<8x8x8xf32> to vector<4x2x8x8xf32>
    %60 = vector.extract_strided_slice %59 {offsets = [0, 0, 0, 0], sizes = [1, 2, 8, 8], strides = [1, 1, 1, 1]} : vector<4x2x8x8xf32> to vector<1x2x8x8xf32>
    %61 = vector.shape_cast %60 : vector<1x2x8x8xf32> to vector<2x8x8xf32>
    %62 = vector.shape_cast %61 : vector<2x8x8xf32> to vector<16x8xf32>
    %63 = vector.extract_strided_slice %59 {offsets = [1, 0, 0, 0], sizes = [1, 2, 8, 8], strides = [1, 1, 1, 1]} : vector<4x2x8x8xf32> to vector<1x2x8x8xf32>
    %64 = vector.shape_cast %63 : vector<1x2x8x8xf32> to vector<2x8x8xf32>
    %65 = vector.shape_cast %64 : vector<2x8x8xf32> to vector<16x8xf32>
    %66 = vector.extract_strided_slice %59 {offsets = [2, 0, 0, 0], sizes = [1, 2, 8, 8], strides = [1, 1, 1, 1]} : vector<4x2x8x8xf32> to vector<1x2x8x8xf32>
    %67 = vector.shape_cast %66 : vector<1x2x8x8xf32> to vector<2x8x8xf32>
    %68 = vector.shape_cast %67 : vector<2x8x8xf32> to vector<16x8xf32>
    %69 = vector.extract_strided_slice %59 {offsets = [3, 0, 0, 0], sizes = [1, 2, 8, 8], strides = [1, 1, 1, 1]} : vector<4x2x8x8xf32> to vector<1x2x8x8xf32>
    %70 = vector.shape_cast %69 : vector<1x2x8x8xf32> to vector<2x8x8xf32>
    %71 = vector.shape_cast %70 : vector<2x8x8xf32> to vector<16x8xf32>
    %72 = tpu.concatenate %62, %65, %68, %71 in 1 : vector<16x8xf32>, vector<16x8xf32>, vector<16x8xf32>, vector<16x8xf32> -> vector<16x32xf32>
    %c0_10 = arith.constant 0 : index
    %c0_11 = arith.constant 0 : index
    %73 = vector.load %arg6[%c0_10, %c0_11] : memref<16x32xf32, #tpu.memory_space<vmem>>, vector<16x32xf32>
    tpu.vector_store %arg6[%c0_10, %c0_11], %72 {strides = array<i32>} : memref<16x32xf32, #tpu.memory_space<vmem>>, vector<16x32xf32>,
    %74 = vector.shape_cast %58 : vector<8x8x8xf32> to vector<4x2x8x8xf32>
    %75 = vector.extract_strided_slice %74 {offsets = [0, 0, 0, 0], sizes = [1, 2, 8, 8], strides = [1, 1, 1, 1]} : vector<4x2x8x8xf32> to vector<1x2x8x8xf32>
    %76 = vector.shape_cast %75 : vector<1x2x8x8xf32> to vector<2x8x8xf32>
    %77 = vector.shape_cast %76 : vector<2x8x8xf32> to vector<16x8xf32>
    %78 = vector.extract_strided_slice %74 {offsets = [1, 0, 0, 0], sizes = [1, 2, 8, 8], strides = [1, 1, 1, 1]} : vector<4x2x8x8xf32> to vector<1x2x8x8xf32>
    %79 = vector.shape_cast %78 : vector<1x2x8x8xf32> to vector<2x8x8xf32>
    %80 = vector.shape_cast %79 : vector<2x8x8xf32> to vector<16x8xf32>
    %81 = vector.extract_strided_slice %74 {offsets = [2, 0, 0, 0], sizes = [1, 2, 8, 8], strides = [1, 1, 1, 1]} : vector<4x2x8x8xf32> to vector<1x2x8x8xf32>
    %82 = vector.shape_cast %81 : vector<1x2x8x8xf32> to vector<2x8x8xf32>
    %83 = vector.shape_cast %82 : vector<2x8x8xf32> to vector<16x8xf32>
    %84 = vector.extract_strided_slice %74 {offsets = [3, 0, 0, 0], sizes = [1, 2, 8, 8], strides = [1, 1, 1, 1]} : vector<4x2x8x8xf32> to vector<1x2x8x8xf32>
    %85 = vector.shape_cast %84 : vector<1x2x8x8xf32> to vector<2x8x8xf32>
    %86 = vector.shape_cast %85 : vector<2x8x8xf32> to vector<16x8xf32>
    %87 = tpu.concatenate %77, %80, %83, %86 in 1 : vector<16x8xf32>, vector<16x8xf32>, vector<16x8xf32>, vector<16x8xf32> -> vector<16x32xf32>
    %c0_12 = arith.constant 0 : index
    %c0_13 = arith.constant 0 : index
    %88 = vector.load %arg2[%c0_12, %c0_13] : memref<32x32xf32, #tpu.memory_space<vmem>>, vector<32x32xf32>
    %cst_14 = arith.constant dense<0.000000e+00> : vector<16x32xf32>
    %89 = tpu.matmul %87, %88, %cst_14 {dimension_numbers = #tpu.dot_dimension_numbers<[1], [0], [0], [1], [0, 0, 1, 1], [], []>} : vector<16x32xf32>, vector<32x32xf32>, vector<16x32xf32> -> vector<16x32xf32>
    %90 = vector.broadcast %3 : vector<1x32xf32> to vector<16x32xf32>
    %91 = arith.addf %89, %90 : vector<16x32xf32>
    %92 = arith.addf %0, %91 : vector<16x32xf32>
    %cst_15 = arith.constant dense<0.000000e+00> : vector<16xf32>
    %93 = vector.multi_reduction <add>, %92, %cst_15 [1] : vector<16x32xf32> to vector<16xf32>
    %94 = vector.shape_cast %93 : vector<16xf32> to vector<16x1xf32>
    %cst_16 = arith.constant 3.200000e+01 : f32
    %95 = vector.broadcast %cst_16 : f32 to vector<16x1xf32>
    %96 = arith.divf %94, %95 : vector<16x1xf32>
    %97 = vector.broadcast %96 : vector<16x1xf32> to vector<16x32xf32>
    %98 = arith.subf %92, %97 : vector<16x32xf32>
    %99 = arith.mulf %98, %98 : vector<16x32xf32>
    %cst_17 = arith.constant dense<0.000000e+00> : vector<16xf32>
    %100 = vector.multi_reduction <add>, %99, %cst_17 [1] : vector<16x32xf32> to vector<16xf32>
    %101 = vector.shape_cast %100 : vector<16xf32> to vector<16x1xf32>
    %cst_18 = arith.constant 0.0322580636 : f32
    %102 = vector.broadcast %cst_18 : f32 to vector<16x1xf32>
    %103 = arith.mulf %101, %102 : vector<16x1xf32>
    %104 = math.sqrt %103 : vector<16x1xf32>
    %cst_19 = arith.constant 9.99999997E-7 : f32
    %105 = vector.broadcast %cst_19 : f32 to vector<16x1xf32>
    %106 = arith.addf %104, %105 : vector<16x1xf32>
    %107 = tpu.reciprocal %106 : vector<16x1xf32> -> vector<16x1xf32>
    %108 = vector.broadcast %96 : vector<16x1xf32> to vector<16x32xf32>
    %109 = arith.subf %92, %108 : vector<16x32xf32>
    %110 = vector.broadcast %6 : vector<1x32xf32> to vector<16x32xf32>
    %111 = arith.mulf %110, %109 : vector<16x32xf32>
    %112 = vector.broadcast %107 : vector<16x1xf32> to vector<16x32xf32>
    %113 = arith.mulf %111, %112 : vector<16x32xf32>
    %114 = vector.broadcast %7 : vector<1x32xf32> to vector<16x32xf32>
    %115 = arith.addf %113, %114 : vector<16x32xf32>
    %c0_20 = arith.constant 0 : index
    %c0_21 = arith.constant 0 : index
    %116 = vector.load %arg3[%c0_20, %c0_21] : memref<96x64xf32, #tpu.memory_space<vmem>>, vector<32x64xf32>
    %c32 = arith.constant 32 : index
    %c0_22 = arith.constant 0 : index
    %117 = vector.load %arg3[%c32, %c0_22] : memref<96x64xf32, #tpu.memory_space<vmem>>, vector<64x32xf32>
    %cst_23 = arith.constant dense<0.000000e+00> : vector<16x64xf32>
    %118 = tpu.matmul %115, %116, %cst_23 {dimension_numbers = #tpu.dot_dimension_numbers<[1], [0], [0], [1], [0, 0, 1, 1], [], []>} : vector<16x32xf32>, vector<32x64xf32>, vector<16x64xf32> -> vector<16x64xf32>
    %119 = vector.broadcast %4 : vector<1x64xf32> to vector<16x64xf32>
    %120 = arith.addf %118, %119 : vector<16x64xf32>
    %cst_24 = arith.constant 0.000000e+00 : f32
    %121 = vector.broadcast %cst_24 : f32 to vector<16x64xf32>
    %122 = arith.maximumf %120, %121 : vector<16x64xf32>
    %cst_25 = arith.constant dense<0.000000e+00> : vector<16x32xf32>
    %123 = tpu.matmul %122, %117, %cst_25 {dimension_numbers = #tpu.dot_dimension_numbers<[1], [0], [0], [1], [0, 0, 1, 1], [], []>} : vector<16x64xf32>, vector<64x32xf32>, vector<16x32xf32> -> vector<16x32xf32>
    %124 = vector.broadcast %5 : vector<1x32xf32> to vector<16x32xf32>
    %125 = arith.addf %123, %124 : vector<16x32xf32>
    %126 = arith.addf %115, %125 : vector<16x32xf32>
    %cst_26 = arith.constant dense<0.000000e+00> : vector<16xf32>
    %127 = vector.multi_reduction <add>, %126, %cst_26 [1] : vector<16x32xf32> to vector<16xf32>
    %128 = vector.shape_cast %127 : vector<16xf32> to vector<16x1xf32>
    %cst_27 = arith.constant 3.200000e+01 : f32
    %129 = vector.broadcast %cst_27 : f32 to vector<16x1xf32>
    %130 = arith.divf %128, %129 : vector<16x1xf32>
    %131 = vector.broadcast %130 : vector<16x1xf32> to vector<16x32xf32>
    %132 = arith.subf %126, %131 : vector<16x32xf32>
    %133 = arith.mulf %132, %132 : vector<16x32xf32>
    %cst_28 = arith.constant dense<0.000000e+00> : vector<16xf32>
    %134 = vector.multi_reduction <add>, %133, %cst_28 [1] : vector<16x32xf32> to vector<16xf32>
    %135 = vector.shape_cast %134 : vector<16xf32> to vector<16x1xf32>
    %cst_29 = arith.constant 0.0322580636 : f32
    %136 = vector.broadcast %cst_29 : f32 to vector<16x1xf32>
    %137 = arith.mulf %135, %136 : vector<16x1xf32>
    %138 = math.sqrt %137 : vector<16x1xf32>
    %cst_30 = arith.constant 9.99999997E-7 : f32
    %139 = vector.broadcast %cst_30 : f32 to vector<16x1xf32>
    %140 = arith.addf %138, %139 : vector<16x1xf32>
    %141 = tpu.reciprocal %140 : vector<16x1xf32> -> vector<16x1xf32>
    %142 = vector.broadcast %130 : vector<16x1xf32> to vector<16x32xf32>
    %143 = arith.subf %126, %142 : vector<16x32xf32>
    %144 = vector.broadcast %8 : vector<1x32xf32> to vector<16x32xf32>
    %145 = arith.mulf %144, %143 : vector<16x32xf32>
    %146 = vector.broadcast %141 : vector<16x1xf32> to vector<16x32xf32>
    %147 = arith.mulf %145, %146 : vector<16x32xf32>
    %148 = vector.broadcast %9 : vector<1x32xf32> to vector<16x32xf32>
    %149 = arith.addf %147, %148 : vector<16x32xf32>
    %c0_31 = arith.constant 0 : index
    %c0_32 = arith.constant 0 : index
    %150 = vector.load %arg5[%c0_31, %c0_32] : memref<16x32xf32, #tpu.memory_space<vmem>>, vector<16x32xf32>
    tpu.vector_store %arg5[%c0_31, %c0_32], %149 {strides = array<i32>} : memref<16x32xf32, #tpu.memory_space<vmem>>, vector<16x32xf32>,
    return
  }
}

</mosaic_0001>

<bundles_post_ra>
// kernel: tpu_custom_call.1
= control target key start
LH: loop header
LB: loop body
LE: loop exit
PB: predicated region body
PF: predicated region fallthrough
CT: control target
= control target key end

     0   :  { %12 = vsyncpa [#allocation3], 0  ;;  %s1681_s0 = inlined_call_operand.vmem [shape: f32[16,32], index: 0, kind: input, shape index: {}]   ;;  %s1682_s1 = inlined_call_operand.vmem [shape: f32[32,128], index: 1, kind: input, shape index: {}]   ;;  %s1683_s2 = inlined_call_operand.vmem [shape: f32[32,32], index: 2, kind: input, shape index: {}]   ;;  %s1684_s3 = inlined_call_operand.vmem [shape: f32[96,64], index: 3, kind: input, shape index: {}]   ;;  %s1685_s4 = inlined_call_operand.vmem [shape: f32[8,128], index: 4, kind: input, shape index: {}]   ;;  %s1686_s5 = inlined_call_operand.hbm [shape: f32[16,32], index: 5, kind: output, shape index: {0}]   ;;  %s1687_s6 = inlined_call_operand.hbm [shape: f32[16,32], index: 6, kind: output, shape index: {1}]  }
   0x1   :  { %v30_v0 = vld [vmem:[%s1682_s1 + $0x18] sm:$0xff]  ;;  %v29_v1 = vld [vmem:[%s1682_s1 + $0x10] sm:$0xff]  ;;  %v28_v2 = vld [vmem:[%s1682_s1 + $0x8] sm:$0xff] }
   0x2   :  { %50 = vmatpush.msra.mxu0 %v30_v0 }
   0x3   :  { %13 = vsyncpa [#allocation5], 0  ;;  %v27_v3 = vld [vmem:[%s1682_s1] sm:$0xff]  ;;  %vm31_vm0 = vcmask 261120   ;;  %v1314_v5 = vld [vmem:[%s1681_s0 + $0x8] sm:$0xff]  ;;  %s1245_s10 = smov 104  }
   0x4   :  { %51 = vmatpush.msra.mxu0 %v29_v1  ;;  %v1307_v4 = vld [vmem:[%s1681_s0] sm:$0xff]  ;;  %s1246_s11 = smov 120   ;;  %s1247_s0 = smov 112   ;;  %vm96_vm1 = vcmask 64512  }
   0x5   :  { %v1321_v6 = vld [vmem:[%s1685_s4] sm:$0xff]  ;;  %s1248_s12 = smov 96   ;;  %s1249_s13 = smov 64  }
   0x6   :  { %52 = vmatpush.msra.mxu0 %v28_v2  ;;  %v61_v7 = vperm.slane %v1321_v6, 0  ;;  %s1250_s14 = smov 16   ;;  %s1251_s15 = smov 8  }
   0x7   :  { %s1252_s16 = smov 24   ;;  %s1066_s25 = sshll.u32 %s1687_s6, 4  ;;  %s1067_s25 = int_to_ptr.hbm [resolvable:$true] %s1066_s25 }
   0x8   :  { %53 = vmatpush.msra.mxu0 %v27_v3  ;;  %s1255_s6 = smov 128   ;;  %s1053_s7 = sshll.u32 %s1686_s5, 4  ;;  %s1054_s7 = int_to_ptr.hbm [resolvable:$true] %s1053_s7 }
   0x9   :  { %1083 = vmatmul.msk.f32.vlgmr.msra.gmra.mxu0 %vm31_vm0, %v1307_v4 }
  0x11   :  { %1084 = vmatmul.msk.f32.gmra.mxu0 %vm31_vm0, %v1314_v5 }
  0x86   :  { %v55_v8 = vpop.f32.mrf.mxu0 }
  0x87   :  { %v1324_v9 = vadd.f32 %v61_v7, %v55_v8 }
  0x89   :  { %90 = vrot.lane.b32.xlu2 %v1324_v9, %s1245_s10  ;;  %82 = vrot.lane.b32.xlu0 %v1324_v9, %s1246_s11  ;;  %v64_v12 = vmul.f32 0.35355338, %v1324_v9 }
  0x8e   :  { %v58_v10 = vpop.f32.mrf.mxu0 }
  0x8f   :  { %v1329_v11 = vadd.f32 %v61_v7, %v58_v10 }
  0x91   :  { %86 = vrot.lane.b32.xlu0 %v1324_v9, %s1247_s0  ;;  %88 = vrot.lane.b32.xlu2 %v1329_v11, %s1247_s0  ;;  %v65_v13 = vmul.f32 0.35355338, %v1329_v11 }
  0x92   :  { %84 = vrot.lane.b32.xlu1 %v1329_v11, %s1246_s11 }
  0x99   :  { %94 = vrot.lane.b32.xlu0 %v1324_v9, %s1248_s12  ;;  %72 = vrot.lane.b32.xlu2 %v64_v12, %s1247_s0 }
  0x9a   :  { %92 = vrot.lane.b32.xlu1 %v1329_v11, %s1245_s10 }
  0xa2   :  { %121 = vrot.lane.b32.xlu1 %v1329_v11, %s1248_s12 }
  0xaa   :  { %68 = vrot.lane.b32.xlu1 %v64_v12, %s1246_s11 }
  0xb2   :  { %70 = vrot.lane.b32.xlu1 %v65_v13, %s1246_s11 }
  0xe3   :  { %v1340_v14 = vpop.permute.xlu2 %90 }
  0xe4   :  { %251 = vrot.lane.b32.xlu1 %v1340_v14, %s1248_s12 }
  0xeb   :  { %v1359_v21 = vpop.permute.xlu2 %88 }
  0xec   :  { %74 = vrot.lane.b32.xlu1 %v65_v13, %s1247_s0 }
  0xf3   :  { %v73_v23 = vpop.permute.xlu2 %72 }
  0xfb   :  { %v1343_v15 = vpop.permute.xlu0 %82 }
  0xfc   :  { %147 = vrot.lane.b32.xlu2 %v1343_v15, %s1248_s12  ;;  %v1127_v51 = vpack.i.bf16 %v1343_v15, %v1324_v9 }
 0x103   :  { %v1346_v16 = vpop.permute.xlu0 %86 }
 0x104   :  { %v1348_v17 = vpop.permute.xlu1 %84  ;;  %199 = vrot.lane.b32.xlu0 %v1346_v16, %s1248_s12 }
 0x105   :  { %v1132_v18 = vpack.i.bf16 %v1348_v17, %v1346_v16 }
 0x10b   :  { %v95_v19 = vpop.permute.xlu0 %94 }
 0x10c   :  { %v1353_v20 = vpop.permute.xlu1 %92  ;;  %1085 = vmatpush.xpose.msk.msra.mxu2 %vm96_vm1, %v95_v19  ;;  %173 = vrot.lane.b32.xlu0 %v1348_v17, %s1248_s12 }
 0x10d   :  { %277 = vrot.lane.b32.xlu2 %v1353_v20, %s1248_s12 }
 0x10f   :  { %1086 = vmatmul.msk.f32.vlgmr.msra.gmra.mxu2 %vm96_vm1, %v64_v12 }
 0x114   :  { %v122_v22 = vpop.permute.xlu1 %121  ;;  %78 = vrot.lane.b32.xlu0 %v65_v13, %s1245_s10 }
 0x115   :  { %225 = vrot.lane.b32.xlu2 %v1359_v21, %s1248_s12  ;;  %1087 = vmatpush.xpose.msk.msrb.mxu2 %vm96_vm1, %v122_v22 }
 0x118   :  { %1088 = vmatmul.msk.f32.vlgmr.msrb.gmra.mxu2 %vm96_vm1, %v65_v13 }
 0x11c   :  { %76 = vrot.lane.b32.xlu0 %v64_v12, %s1245_s10  ;;  %v69_v24 = vpop.permute.xlu1 %68 }
 0x124   :  { %v71_v26 = vpop.permute.xlu1 %70 }
 0x156   :  { %v148_v25 = vpop.permute.xlu2 %147  ;;  %v252_v28 = vpop.permute.xlu1 %251 }
 0x157   :  { %1089 = vmatpush.xpose.msk.msra.mxu3 %vm96_vm1, %v148_v25 }
 0x15a   :  { %1090 = vmatmul.msk.f32.vlgmr.msra.gmra.mxu3 %vm96_vm1, %v69_v24 }
 0x15e   :  { %v75_v30 = vpop.permute.xlu1 %74 }
 0x167   :  { %v278_v27 = vpop.permute.xlu2 %277 }
 0x16f   :  { %v226_v29 = vpop.permute.xlu2 %225 }
 0x170   :  { %1095 = vmatpush.xpose.msk.msrb.mxu3 %vm96_vm1, %v226_v29 }
 0x173   :  { %1096 = vmatmul.msk.f32.vlgmr.msrb.gmra.mxu3 %vm96_vm1, %v75_v30 }
 0x176   :  { %v200_v31 = vpop.permute.xlu0 %199 }
 0x177   :  { %1093 = vmatpush.xpose.msk.msra.mxu2 %vm96_vm1, %v200_v31 }
 0x17a   :  { %1094 = vmatmul.msk.f32.vlgmr.msra.gmra.mxu2 %vm96_vm1, %v73_v23 }
 0x17b   :  { %1099 = vmatpush.xpose.msk.msrb.mxu2 %vm96_vm1, %v278_v27 }
 0x17e   :  { %v174_v32 = vpop.permute.xlu0 %173 }
 0x17f   :  { %1091 = vmatpush.xpose.msk.msra.mxu1 %vm96_vm1, %v174_v32 }
 0x182   :  { %1092 = vmatmul.msk.f32.vlgmr.msra.gmra.mxu1 %vm96_vm1, %v71_v26 }
 0x183   :  { %1097 = vmatpush.xpose.msk.msrb.mxu1 %vm96_vm1, %v252_v28 }
 0x186   :  { %v79_v33 = vpop.permute.xlu0 %78 }
 0x187   :  { %1100 = vmatmul.msk.f32.vlgmr.msrb.gmra.mxu2 %vm96_vm1, %v79_v33 }
 0x18e   :  { %v77_v34 = vpop.permute.xlu0 %76 }
 0x18f   :  { %1098 = vmatmul.msk.f32.vlgmr.msrb.gmra.mxu1 %vm96_vm1, %v77_v34 }
 0x192   :  { %v118_v35 = vpop.f32.mrf.mxu2 }
 0x193   :  { %v303_v36 = vsel %vm96_vm1, %v118_v35, -inf }
 0x194   :  { %304 = vmax.xlane.f32.xlu2 %v303_v36 }
 0x19b   :  { %v144_v39 = vpop.f32.mrf.mxu2 }
 0x19c   :  { %v306_v44 = vsel %vm96_vm1, %v144_v39, -inf }
 0x1dd   :  { %v170_v37 = vpop.f32.mrf.mxu3 }
 0x1de   :  { %v309_v38 = vsel %vm96_vm1, %v170_v37, -inf }
 0x1df   :  { %310 = vmax.xlane.f32.xlu0 %v309_v38 }
 0x1f6   :  { %v248_v48 = vpop.f32.mrf.mxu3 }
 0x1f7   :  { %v318_v50 = vsel %vm96_vm1, %v248_v48, -inf }
 0x1fd   :  { %v222_v40 = vpop.f32.mrf.mxu2 }
 0x1fe   :  { %v315_v41 = vsel %vm96_vm1, %v222_v40, -inf }
 0x1ff   :  { %v196_v42 = vpop.f32.mrf.mxu1  ;;  %316 = vmax.xlane.f32.xlu1 %v315_v41  ;;  %v1137_v41 = vpack.i.bf16 %v1340_v14, %v1329_v11 }
 0x200   :  { %v312_v43 = vsel %vm96_vm1, %v196_v42, -inf }
 0x201   :  { %313 = vmax.xlane.f32.xlu2 %v312_v43 }
 0x207   :  { %v305_v52 = vpop.xlane.xlu2 %304 }
 0x208   :  { %v327_v53 = vsub.f32 %v118_v35, %v305_v52 }
 0x209   :  { %307 = vmax.xlane.f32.xlu2 %v306_v44 }
 0x20a   :  { %v300_v45 = vpop.f32.mrf.mxu2  ;;  %v335_v54 = vmul.f32 1.442695, %v327_v53 }
 0x20b   :  { %v324_v46 = vsel %vm96_vm1, %v300_v45, -inf }
 0x20c   :  { %v274_v47 = vpop.f32.mrf.mxu1  ;;  %325 = vmax.xlane.f32.xlu1 %v324_v46  ;;  %1142 = vpow2.f32 %v335_v54 }
 0x20d   :  { %v321_v49 = vsel %vm96_vm1, %v274_v47, -inf }
 0x20e   :  { %322 = vmax.xlane.f32.xlu0 %v321_v49 }
 0x211   :  { %319 = vmax.xlane.f32.xlu2 %v318_v50 }
 0x212   :  { %v1393_v55 = vpop.eup %1142 }
 0x213   :  { %v351_v56 = vsel %vm96_vm1, %v1393_v55, 0.0 }
 0x222   :  { %1133 = vrot.lane.b32.xlu0 %v1132_v18, %s1249_s13 }
 0x225   :  { %1128 = vrot.lane.b32.xlu1 %v1127_v51, %s1249_s13 }
 0x24c   :  { %352 = vadd.xlane.f32.xlu0 %v351_v56 }
 0x252   :  { %v311_v63 = vpop.xlane.xlu0 %310 }
 0x253   :  { %v329_v8 = vsub.f32 %v170_v37, %v311_v63 }
 0x255   :  { %v339_v16 = vmul.f32 1.442695, %v329_v8 }
 0x272   :  { %v317_v57 = vpop.xlane.xlu1 %316 }
 0x273   :  { %v331_v58 = vsub.f32 %v222_v40, %v317_v57 }
 0x274   :  { %v314_v59 = vpop.xlane.xlu2 %313 }
 0x275   :  { %v343_v60 = vmul.f32 1.442695, %v331_v58  ;;  %v330_v61 = vsub.f32 %v196_v42, %v314_v59 }
 0x277   :  { %1144 = vpow2.f32 %v343_v60  ;;  %v341_v62 = vmul.f32 1.442695, %v330_v61 }
 0x279   :  { %1146 = vpow2.f32 %v341_v62 }
 0x27c   :  { %v308_v0 = vpop.xlane.xlu2 %307 }
 0x27d   :  { %v1397_v1 = vpop.eup %1144  ;;  %v328_v2 = vsub.f32 %v144_v39, %v308_v0 }
 0x27e   :  { %v363_v3 = vsel %vm96_vm1, %v1397_v1, 0.0 }
 0x27f   :  { %v1401_v7 = vpop.eup %1146  ;;  %v337_v9 = vmul.f32 1.442695, %v328_v2  ;;  %364 = vadd.xlane.f32.xlu2 %v363_v3  ;;  %v326_v10 = vpop.xlane.xlu1 %325 }
 0x280   :  { %v334_v12 = vsub.f32 %v300_v45, %v326_v10  ;;  %v360_v13 = vsel %vm96_vm1, %v1401_v7, 0.0 }
 0x281   :  { %1148 = vpow2.f32 %v337_v9  ;;  %361 = vadd.xlane.f32.xlu0 %v360_v13  ;;  %v323_v17 = vpop.xlane.xlu0 %322 }
 0x282   :  { %v349_v15 = vmul.f32 1.442695, %v334_v12  ;;  %v333_v23 = vsub.f32 %v274_v47, %v323_v17 }
 0x284   :  { %1150 = vpow2.f32 %v349_v15  ;;  %v320_v18 = vpop.xlane.xlu2 %319  ;;  %v347_v27 = vmul.f32 1.442695, %v333_v23 }
 0x285   :  { %v332_v19 = vsub.f32 %v248_v48, %v320_v18  ;;  %1152 = vpow2.f32 %v339_v16 }
 0x287   :  { %v1405_v22 = vpop.eup %1148  ;;  %v345_v24 = vmul.f32 1.442695, %v332_v19 }
 0x288   :  { %v354_v25 = vsel %vm96_vm1, %v1405_v22, 0.0 }
 0x289   :  { %1154 = vpow2.f32 %v345_v24  ;;  %355 = vadd.xlane.f32.xlu1 %v354_v25 }
 0x28a   :  { %v1409_v26 = vpop.eup %1150  ;;  %1156 = vpow2.f32 %v347_v27 }
 0x28b   :  { %v372_v28 = vsel %vm96_vm1, %v1409_v26, 0.0  ;;  %v1413_v29 = vpop.eup %1152 }
 0x28c   :  { %373 = vadd.xlane.f32.xlu0 %v372_v28  ;;  %v357_v32 = vsel %vm96_vm1, %v1413_v29, 0.0 }
 0x28f   :  { %v1415_v30 = vpop.eup %1154 }
 0x290   :  { %v366_v31 = vsel %vm96_vm1, %v1415_v30, 0.0  ;;  %v1421_v34 = vpop.eup %1156 }
 0x291   :  { %367 = vadd.xlane.f32.xlu2 %v366_v31  ;;  %358 = vadd.xlane.f32.xlu1 %v357_v32  ;;  %v369_v39 = vsel %vm96_vm1, %v1421_v34, 0.0 }
 0x294   :  { %v1134_v33 = vpop.permute.xlu0 %1133 }
 0x295   :  { %v1136_v35 = vunpack.i.h.bf16 %v1134_v33  ;;  %v1135_v40 = vunpack.i.l.bf16 %v1134_v33 }
 0x297   :  { %594 = vmatpush.msra.mxu2 %v1136_v35  ;;  %v1129_v36 = vpop.permute.xlu1 %1128 }
 0x298   :  { %v1131_v37 = vunpack.i.h.bf16 %v1129_v36  ;;  %v1130_v38 = vunpack.i.l.bf16 %v1129_v36 }
 0x299   :  { %370 = vadd.xlane.f32.xlu2 %v369_v39 }
 0x29a   :  { %516 = vmatpush.msra.mxu3 %v1130_v38  ;;  %568 = vmatpush.msra.mxu1 %v1131_v37 }
 0x29c   :  { %620 = vmatpush.msrb.mxu3 %v1135_v40 }
 0x2a0   :  { %625 = vrot.lane.b32.xlu0 %v1359_v21, %s1249_s13 }
 0x2aa   :  { %677 = vrot.lane.b32.xlu1 %v1353_v20, %s1249_s13 }
 0x2b1   :  { %1138 = vrot.lane.b32.xlu2 %v1137_v41, %s1249_s13 }
 0x2bf   :  { %v353_v42 = vpop.xlane.xlu0 %352 }
 0x2c0   :  { %1158 = vrcp.f32 %v353_v42  ;;  %v386_v46 = vand.u32 2147483648, %v353_v42  ;;  %v384_v48 = vand.u32 2147483647, %v353_v42  ;;  %vm380_vm3 = vweird.f32 %v353_v42 }
 0x2c2   :  { %v387_v21 = vor.u32 1.1754944e-38, %v386_v46  ;;  %vm385_vm5 = vcmp.eq.f32.partialorder %v384_v48, 8.507059e+37 }
 0x2c6   :  { %v1159_v43 = vpop.eup %1158 }
 0x2c7   :  { %v376_v44 = vmul.f32 %v1159_v43, %v353_v42  ;;  %vm381_vm2 = vweird.f32 %v1159_v43 }
 0x2c8   :  { %vm382_vm4 = vmor %vm380_vm3, %vm381_vm2 }
 0x2c9   :  { %v377_v45 = vsub.f32 1.0, %v376_v44  ;;  %v761_v44 = vld [vmem:[%s1683_s2] sm:$0xff] }
 0x2cb   :  { %v378_v47 = vmul.f32 %v1159_v43, %v377_v45 }
 0x2cd   :  { %v379_v49 = vadd.f32 %v1159_v43, %v378_v47 }
 0x2cf   :  { %v383_v50 = vsel %vm382_vm4, %v1159_v43, %v379_v49  ;;  %v762_v43 = vld [vmem:[%s1683_s2 + $0x8] sm:$0xff] }
 0x2d0   :  { %v388_v20 = vsel %vm385_vm5, %v387_v21, %v383_v50 }
 0x2d1   :  { %v1433_v11 = vmul.f32 %v1393_v55, %v388_v20 }
 0x2d3   :  { %1101 = vmatmul.msk.f32.vlgmr.msra.gmra.mxu3 %vm96_vm1, %v1433_v11 }
 0x2f2   :  { %v365_v14 = vpop.xlane.xlu2 %364 }
 0x2f3   :  { %1160 = vrcp.f32 %v365_v14  ;;  %v442_v59 = vand.u32 2147483648, %v365_v14  ;;  %v440_v61 = vand.u32 2147483647, %v365_v14  ;;  %vm436_vm7 = vweird.f32 %v365_v14 }
 0x2f4   :  { %v362_v51 = vpop.xlane.xlu0 %361 }
 0x2f5   :  { %1162 = vrcp.f32 %v362_v51  ;;  %v426_v62 = vand.u32 2147483647, %v362_v51  ;;  %v428_v63 = vand.u32 2147483648, %v362_v51  ;;  %v443_v8 = vor.u32 1.1754944e-38, %v442_v59 }
 0x2f6   :  { %vm441_vm10 = vcmp.eq.f32.partialorder %v440_v61, 8.507059e+37  ;;  %vm422_vm11 = vweird.f32 %v362_v51 }
 0x2f7   :  { %v429_v15 = vor.u32 1.1754944e-38, %v428_v63  ;;  %vm427_vm13 = vcmp.eq.f32.partialorder %v426_v62, 8.507059e+37 }
 0x2f9   :  { %v1161_v52 = vpop.eup %1160 }
 0x2fa   :  { %v432_v53 = vmul.f32 %v1161_v52, %v365_v14  ;;  %vm437_vm6 = vweird.f32 %v1161_v52 }
 0x2fb   :  { %v1163_v54 = vpop.eup %1162  ;;  %vm438_vm9 = vmor %vm436_vm7, %vm437_vm6 }
 0x2fc   :  { %v433_v56 = vsub.f32 1.0, %v432_v53  ;;  %v418_v57 = vmul.f32 %v1163_v54, %v362_v51  ;;  %v356_v58 = vpop.xlane.xlu1 %355  ;;  %vm423_vm8 = vweird.f32 %v1163_v54 }
 0x2fd   :  { %1164 = vrcp.f32 %v356_v58  ;;  %vm424_vm12 = vmor %vm422_vm11, %vm423_vm8  ;;  %v398_v35 = vand.u32 2147483647, %v356_v58  ;;  %v400_v36 = vand.u32 2147483648, %v356_v58  ;;  %vm394_vm15 = vweird.f32 %v356_v58 }
 0x2fe   :  { %v434_v60 = vmul.f32 %v1161_v52, %v433_v56  ;;  %v419_v55 = vsub.f32 1.0, %v418_v57 }
 0x2ff   :  { %v1437_v0 = vpop.xlane.xlu0 %373  ;;  %vm1469_vm3 = vcmp.eq.f32.partialorder %v398_v35, 8.507059e+37  ;;  %v401_v45 = vor.u32 1.1754944e-38, %v400_v36 }
 0x300   :  { %v435_v2 = vadd.f32 %v1161_v52, %v434_v60  ;;  %v420_v3 = vmul.f32 %v1163_v54, %v419_v55  ;;  %1166 = vrcp.f32 %v1437_v0  ;;  %vm478_vm4 = vweird.f32 %v1437_v0 }
 0x301   :  { %v482_v47 = vand.u32 2147483647, %v1437_v0  ;;  %v484_v50 = vand.u32 2147483648, %v1437_v0 }
 0x302   :  { %v439_v9 = vsel %vm438_vm9, %v1161_v52, %v435_v2  ;;  %v421_v10 = vadd.f32 %v1163_v54, %v420_v3 }
 0x303   :  { %v1165_v12 = vpop.eup %1164  ;;  %v444_v13 = vsel %vm441_vm10, %v443_v8, %v439_v9 }
 0x304   :  { %v425_v16 = vsel %vm424_vm12, %v1163_v54, %v421_v10  ;;  %v390_v17 = vmul.f32 %v1165_v12, %v356_v58  ;;  %v1440_v18 = vpop.xlane.xlu2 %367  ;;  %v359_v19 = vpop.xlane.xlu1 %358  ;;  %v1443_v23 = vmul.f32 %v1397_v1, %v444_v13  ;;  %vm395_vm14 = vweird.f32 %v1165_v12 }
 0x305   :  { %v430_v24 = vsel %vm427_vm13, %v429_v15, %v425_v16  ;;  %1168 = vrcp.f32 %v1440_v18  ;;  %vm1465_vm2 = vmor %vm394_vm15, %vm395_vm14  ;;  %v414_v49 = vand.u32 2147483648, %v359_v19  ;;  %v412_v14 = vand.u32 2147483647, %v359_v19 }
 0x306   :  { %v1446_v25 = vpop.eup %1166  ;;  %v391_v27 = vsub.f32 1.0, %v390_v17  ;;  %1170 = vrcp.f32 %v359_v19  ;;  %1105 = vmatmul.msk.f32.vlgmr.msrb.gmra.mxu3 %vm96_vm1, %v1443_v23  ;;  %v1453_v32 = vmul.f32 %v1401_v7, %v430_v24  ;;  %vm450_vm7 = vweird.f32 %v1440_v18 }
 0x307   :  { %v474_v28 = vmul.f32 %v1446_v25, %v1437_v0  ;;  %vm479_vm6 = vweird.f32 %v1446_v25  ;;  %v454_v52 = vand.u32 2147483647, %v1440_v18  ;;  %v456_v54 = vand.u32 2147483648, %v1440_v18 }
 0x308   :  { %v392_v31 = vmul.f32 %v1165_v12, %v391_v27  ;;  %1104 = vmatmul.msk.f32.vlgmr.msra.gmra.mxu2 %vm96_vm1, %v1453_v32  ;;  %vm408_vm8 = vweird.f32 %v359_v19  ;;  %v415_v59 = vor.u32 1.1754944e-38, %v414_v49  ;;  %vm1491_vm11 = vmor %vm478_vm4, %vm479_vm6  ;;  %vm413_vm12 = vcmp.eq.f32.partialorder %v412_v14, 8.507059e+37 }
 0x309   :  { %v475_v33 = vsub.f32 1.0, %v474_v28  ;;  %vm483_vm13 = vcmp.eq.f32.partialorder %v482_v47, 8.507059e+37  ;;  %v457_v24 = vor.u32 1.1754944e-38, %v456_v54  ;;  %vm723_vm6 = vcmask 130048  }
 0x30a   :  { %v393_v38 = vadd.f32 %v1165_v12, %v392_v31  ;;  %v765_v54 = vperm.slane %v1321_v6, 1 }
 0x30b   :  { %v1457_v1 = vpop.eup %1168  ;;  %v476_v7 = vmul.f32 %v1446_v25, %v475_v33 }
 0x30c   :  { %v1171_v37 = vpop.eup %1170  ;;  %v446_v39 = vmul.f32 %v1457_v1, %v1440_v18  ;;  %v1461_v40 = vpop.xlane.xlu2 %370  ;;  %v397_v21 = vsel %vm1465_vm2, %v1165_v12, %v393_v38  ;;  %vm451_vm9 = vweird.f32 %v1457_v1  ;;  %v485_v12 = vor.u32 1.1754944e-38, %v484_v50 }
 0x30d   :  { %v404_v41 = vmul.f32 %v1171_v37, %v359_v19  ;;  %1172 = vrcp.f32 %v1461_v40  ;;  %vm409_vm5 = vweird.f32 %v1171_v37  ;;  %v477_v51 = vadd.f32 %v1446_v25, %v476_v7  ;;  %vm1505_vm14 = vmor %vm450_vm7, %vm451_vm9  ;;  %v764_v7 = vld [vmem:[%s1683_s2 + $0x18] sm:$0xff] }
 0x30e   :  { %v447_v42 = vsub.f32 1.0, %v446_v39  ;;  %v402_v57 = vsel %vm1469_vm3, %v401_v45, %v397_v21  ;;  %vm410_vm10 = vmor %vm408_vm8, %vm409_vm5  ;;  %v470_v13 = vand.u32 2147483648, %v1461_v40  ;;  %v468_v17 = vand.u32 2147483647, %v1461_v40  ;;  %784 = vmatpush.msra.mxu3 %v764_v7 }
 0x30f   :  { %v405_v46 = vsub.f32 1.0, %v404_v41  ;;  %v481_v3 = vsel %vm1491_vm11, %v1446_v25, %v477_v51  ;;  %v1499_v10 = vmul.f32 %v1405_v22, %v402_v57  ;;  %vm455_vm2 = vcmp.eq.f32.partialorder %v454_v52, 8.507059e+37 }
 0x310   :  { %v448_v48 = vmul.f32 %v1457_v1, %v447_v42  ;;  %v486_v19 = vsel %vm483_vm13, %v485_v12, %v481_v3  ;;  %vm464_vm3 = vweird.f32 %v1461_v40  ;;  %v471_v27 = vor.u32 1.1754944e-38, %v470_v13  ;;  %v763_v42 = vld [vmem:[%s1683_s2 + $0x10] sm:$0xff] }
 0x311   :  { %v406_v20 = vmul.f32 %v1171_v37, %v405_v46  ;;  %vm469_vm5 = vcmp.eq.f32.partialorder %v468_v17, 8.507059e+37  ;;  %v1523_v33 = vmul.f32 %v1409_v26, %v486_v19  ;;  %785 = vmatpush.msra.mxu3 %v763_v42  ;;  %vm726_vm7 = vcmask 195584  }
 0x312   :  { %v449_v58 = vadd.f32 %v1457_v1, %v448_v48  ;;  %v626_v18 = vpop.permute.xlu0 %625 }
 0x313   :  { %v1173_v53 = vpop.eup %1172  ;;  %v407_v56 = vadd.f32 %v1171_v37, %v406_v20  ;;  %786 = vmatpush.msra.mxu3 %v762_v43 }
 0x314   :  { %v460_v60 = vmul.f32 %v1173_v53, %v1461_v40  ;;  %v1139_v61 = vpop.permute.xlu2 %1138  ;;  %v453_v22 = vsel %vm1505_vm14, %v1457_v1, %v449_v58  ;;  %vm465_vm15 = vweird.f32 %v1173_v53 }
 0x315   :  { %v411_v62 = vsel %vm410_vm10, %v1171_v37, %v407_v56  ;;  %v1141_v63 = vunpack.i.h.bf16 %v1139_v61  ;;  %v1140_v2 = vunpack.i.l.bf16 %v1139_v61  ;;  %v458_v25 = vsel %vm455_vm2, %v457_v24, %v453_v22  ;;  %vm466_vm4 = vmor %vm464_vm3, %vm465_vm15  ;;  %787 = vmatpush.msra.mxu3 %v761_v44 }
 0x316   :  { %v416_v8 = vsel %vm413_vm12, %v415_v59, %v411_v62  ;;  %v461_v9 = vsub.f32 1.0, %v460_v60  ;;  %v1528_v35 = vmul.f32 %v1415_v30, %v458_v25  ;;  %v889_v25 = vld [vmem:[%s1684_s3 + $0x18] sm:$0xff] }
 0x317   :  { %542 = vmatpush.msrb.mxu0 %v1140_v2  ;;  %672 = vmatpush.msrb.mxu1 %v1141_v63  ;;  %v1511_v15 = vmul.f32 %v1413_v29, %v416_v8  ;;  %v1253_v63 = vmov 32.0  }
 0x318   :  { %v462_v16 = vmul.f32 %v1173_v53, %v461_v9  ;;  %1102 = vmatmul.msk.f32.vlgmr.msrb.gmra.mxu0 %vm96_vm1, %v1499_v10  ;;  %1174 = vrcp.f32 %v1253_v63  ;;  %v878_v63 = vperm.slane %v1321_v6, 4 }
 0x319   :  { %1103 = vmatmul.msk.f32.vlgmr.msra.gmra.mxu1 %vm96_vm1, %v1511_v15  ;;  %646 = vmatpush.msra.mxu0 %v626_v18 }
 0x31a   :  { %v463_v29 = vadd.f32 %v1173_v53, %v462_v16 }
 0x31b   :  { %917 = vmatpush.msrb.mxu0 %v889_v25 }
 0x31c   :  { %v467_v28 = vsel %vm466_vm4, %v1173_v53, %v463_v29  ;;  %v678_v31 = vpop.permute.xlu1 %677 }
 0x31d   :  { %v472_v1 = vsel %vm469_vm5, %v471_v27, %v467_v28  ;;  %698 = vmatpush.msrb.mxu2 %v678_v31  ;;  %v888_v27 = vld [vmem:[%s1684_s3 + $0x10] sm:$0xff]  ;;  %v887_v28 = vld [vmem:[%s1684_s3 + $0x8] sm:$0xff] }
 0x31e   :  { %1108 = vmatmul.msk.f32.vlgmr.msrb.gmra.mxu2 %vm96_vm1, %v1523_v33  ;;  %v1531_v36 = vmul.f32 %v1421_v34, %v472_v1  ;;  %v1175_v2 = vpop.eup %1174  ;;  %918 = vmatpush.msrb.mxu0 %v888_v27  ;;  %v886_v1 = vld [vmem:[%s1684_s3] sm:$0xff] }
 0x31f   :  { %v804_v3 = vmul.f32 32.0, %v1175_v2  ;;  %vm808_vm8 = vweird.f32 %v1175_v2 }
 0x320   :  { %1106 = vmatmul.msk.f32.vlgmr.msra.gmra.mxu0 %vm96_vm1, %v1528_v35 }
 0x321   :  { %1107 = vmatmul.msk.f32.vlgmr.msrb.gmra.mxu1 %vm96_vm1, %v1531_v36  ;;  %v805_v8 = vsub.f32 1.0, %v804_v3  ;;  %919 = vmatpush.msrb.mxu0 %v887_v28 }
 0x323   :  { %v806_v9 = vmul.f32 %v1175_v2, %v805_v8  ;;  %920 = vmatpush.msrb.mxu0 %v886_v1 }
 0x325   :  { %v807_v12 = vadd.f32 %v1175_v2, %v806_v9 }
 0x327   :  { %v1568_v0 = vsel %vm808_vm8, %v1175_v2, %v807_v12 }
 0x356   :  { %v518_v37 = vpop.f32.mrf.mxu3 }
 0x389   :  { %v622_v26 = vpop.f32.mrf.mxu3 }
 0x38a   :  { %741 = vrot.lane.b32.xlu0 %v622_v26, %s1250_s14 }
 0x38b   :  { %v596_v40 = vpop.f32.mrf.mxu2 }
 0x395   :  { %v544_v38 = vpop.f32.mrf.mxu0 }
 0x396   :  { %v570_v39 = vpop.f32.mrf.mxu1 }
 0x397   :  { %733 = vrot.lane.b32.xlu1 %v570_v39, %s1251_s15 }
 0x39d   :  { %v648_v30 = vpop.f32.mrf.mxu0 }
 0x39e   :  { %v674_v34 = vpop.f32.mrf.mxu1  ;;  %743 = vrot.lane.b32.xlu0 %v648_v30, %s1250_s14 }
 0x39f   :  { %735 = vrot.lane.b32.xlu1 %v596_v40, %s1251_s15  ;;  %749 = vrot.lane.b32.xlu2 %v674_v34, %s1252_s16 }
 0x3a1   :  { %v700_v41 = vpop.f32.mrf.mxu2 }
 0x3a7   :  { %751 = vrot.lane.b32.xlu2 %v700_v41, %s1252_s16 }
 0x3f9   :  { %v750_v46 = vpop.permute.xlu2 %749 }
 0x3fc   :  { %v742_v45 = vpop.permute.xlu0 %741 }
 0x401   :  { %v752_v51 = vpop.permute.xlu2 %751 }
 0x409   :  { %v734_v47 = vpop.permute.xlu1 %733 }
 0x40a   :  { %v755_v48 = vsel %vm96_vm1, %v518_v37, %v734_v47 }
 0x40b   :  { %v757_v49 = vsel %vm723_vm6, %v755_v48, %v742_v45 }
 0x40c   :  { %v759_v21 = vsel %vm726_vm7, %v757_v49, %v750_v46 }
 0x40d   :  { %1109 = vmatmul.msk.f32.vlgmr.msra.gmra.mxu3 %vm31_vm0, %v759_v21  ;;  %v897_v21 = vld [vmem:[%s1684_s3 + $0x58] sm:$0xff] }
 0x40e   :  { %946 = vmatpush.msra.mxu1 %v897_v21 }
 0x410   :  { %v744_v50 = vpop.permute.xlu0 %743 }
 0x411   :  { %v736_v20 = vpop.permute.xlu1 %735 }
 0x412   :  { %v756_v14 = vsel %vm96_vm1, %v544_v38, %v736_v20 }
 0x413   :  { %v758_v52 = vsel %vm723_vm6, %v756_v14, %v744_v50  ;;  %v896_v50 = vld [vmem:[%s1684_s3 + $0x50] sm:$0xff] }
 0x414   :  { %v760_v53 = vsel %vm726_vm7, %v758_v52, %v752_v51  ;;  %v895_v51 = vld [vmem:[%s1684_s3 + $0x48] sm:$0xff]  ;;  %947 = vmatpush.msra.mxu1 %v896_v50 }
 0x415   :  { %1110 = vmatmul.msk.f32.gmra.mxu3 %vm31_vm0, %v760_v53  ;;  %v894_v53 = vld [vmem:[%s1684_s3 + $0x40] sm:$0xff] }
 0x416   :  { %948 = vmatpush.msra.mxu1 %v895_v51 }
 0x418   :  { %949 = vmatpush.msra.mxu1 %v894_v53 }
 0x490   :  { %v789_v56 = vpop.f32.mrf.mxu3 }
 0x491   :  { %v790_v57 = vadd.f32 %v789_v56, %v765_v54 }
 0x493   :  { %v795_v58 = vadd.f32 %v790_v57, %v1307_v4  ;;  %v893_v57 = vld [vmem:[%s1684_s3 + $0x38] sm:$0xff] }
 0x494   :  { %950 = vmatpush.msra.mxu1 %v893_v57 }
 0x495   :  { %v797_v59 = vsel %vm31_vm0, %v795_v58, 0.0 }
 0x496   :  { %798 = vadd.xlane.f32.xlu1 %v797_v59 }
 0x498   :  { %v792_v60 = vpop.f32.mrf.mxu3 }
 0x499   :  { %v793_v61 = vadd.f32 %v792_v60, %v765_v54 }
 0x49b   :  { %v796_v55 = vadd.f32 %v793_v61, %v1314_v5 }
 0x49d   :  { %v800_v62 = vsel %vm31_vm0, %v796_v55, 0.0 }
 0x49e   :  { %801 = vadd.xlane.f32.xlu0 %v800_v62 }
 0x509   :  { %v799_v4 = vpop.xlane.xlu1 %798 }
 0x50a   :  { %v810_v13 = vmul.f32 %v1568_v0, %v799_v4 }
 0x50c   :  { %v1571_v22 = vsub.f32 %v795_v58, %v810_v13 }
 0x50e   :  { %v814_v5 = vmul.f32 %v1571_v22, %v1571_v22  ;;  %v879_v4 = vmul.f32 %v878_v63, %v1571_v22 }
 0x510   :  { %v816_v16 = vsel %vm31_vm0, %v814_v5, 0.0 }
 0x511   :  { %817 = vadd.xlane.f32.xlu2 %v816_v16  ;;  %v802_v17 = vpop.xlane.xlu0 %801  ;;  %v883_v16 = vperm.slane %v1321_v6, 5 }
 0x512   :  { %v811_v18 = vmul.f32 %v1568_v0, %v802_v17 }
 0x514   :  { %v1577_v19 = vsub.f32 %v796_v55, %v811_v18 }
 0x516   :  { %v815_v24 = vmul.f32 %v1577_v19, %v1577_v19 }
 0x518   :  { %v819_v29 = vsel %vm31_vm0, %v815_v24, 0.0 }
 0x519   :  { %820 = vadd.xlane.f32.xlu1 %v819_v29 }
 0x584   :  { %v818_v31 = vpop.xlane.xlu2 %817 }
 0x585   :  { %v822_v37 = vmul.f32 0.032258064, %v818_v31 }
 0x587   :  { %1176 = vrsqrt.f32 %v822_v37  ;;  %vm831_vm9 = vcmp.eq.f32.partialorder %v822_v37, inf  ;;  %v834_v46 = vand.u32 2147483648, %v822_v37  ;;  %vm833_vm10 = vcmp.eq.f32.partialorder %v822_v37, 0.0 }
 0x58c   :  { %v821_v26 = vpop.xlane.xlu1 %820 }
 0x58d   :  { %v1177_v38 = vpop.eup %1176  ;;  %v823_v39 = vmul.f32 0.032258064, %v821_v26 }
 0x58e   :  { %v825_v30 = vmul.f32 %v1177_v38, %v822_v37 }
 0x58f   :  { %1178 = vrsqrt.f32 %v823_v39  ;;  %vm843_vm11 = vcmp.eq.f32.partialorder %v823_v39, inf  ;;  %v846_v56 = vand.u32 2147483648, %v823_v39  ;;  %vm845_vm12 = vcmp.eq.f32.partialorder %v823_v39, 0.0 }
 0x590   :  { %v826_v40 = vmul.f32 %v1177_v38, %v825_v30 }
 0x592   :  { %v827_v34 = vmul.f32 0.5, %v826_v40  ;;  %v892_v40 = vld [vmem:[%s1684_s3 + $0x30] sm:$0xff] }
 0x593   :  { %951 = vmatpush.msra.mxu1 %v892_v40 }
 0x594   :  { %v828_v41 = vsub.f32 1.5, %v827_v34  ;;  %v891_v34 = vld [vmem:[%s1684_s3 + $0x28] sm:$0xff] }
 0x595   :  { %v1179_v7 = vpop.eup %1178  ;;  %952 = vmatpush.msra.mxu1 %v891_v34 }
 0x596   :  { %v829_v42 = vmul.f32 %v1177_v38, %v828_v41  ;;  %v837_v43 = vmul.f32 %v1179_v7, %v823_v39  ;;  %v898_v41 = vperm.slane %v1321_v6, 2 }
 0x598   :  { %v830_v44 = vmul.f32 %v829_v42, %v822_v37  ;;  %v838_v45 = vmul.f32 %v1179_v7, %v837_v43 }
 0x59a   :  { %v832_v47 = vsel %vm831_vm9, %v822_v37, %v830_v44  ;;  %v839_v48 = vmul.f32 0.5, %v838_v45  ;;  %v880_v37 = vmul.f32 %v878_v63, %v1577_v19  ;;  %v890_v19 = vld [vmem:[%s1684_s3 + $0x20] sm:$0xff]  ;;  %vm931_vm9 = vcmask 523264   ;;  %s1254_s3 = smov [#allocation4]  }
 0x59b   :  { %v835_v49 = vsel %vm833_vm10, %v834_v46, %v832_v47  ;;  %953 = vmatpush.msra.mxu1 %v890_v19  ;;  %v930_v47 = vperm.slane %v1321_v6, 3 }
 0x59c   :  { %v848_v20 = vadd.f32 1e-06, %v835_v49  ;;  %v840_v14 = vsub.f32 1.5, %v839_v48 }
 0x59e   :  { %1180 = vrcp.f32 %v848_v20  ;;  %v841_v52 = vmul.f32 %v1179_v7, %v840_v14  ;;  %v861_v2 = vand.u32 2147483648, %v848_v20  ;;  %v859_v8 = vand.u32 2147483647, %v848_v20 }
 0x59f   :  { %vm855_vm14 = vweird.f32 %v848_v20 }
 0x5a0   :  { %v842_v54 = vmul.f32 %v841_v52, %v823_v39  ;;  %v862_v13 = vor.u32 1.1754944e-38, %v861_v2  ;;  %vm860_vm2 = vcmp.eq.f32.partialorder %v859_v8, 8.507059e+37 }
 0x5a2   :  { %v844_v58 = vsel %vm843_vm11, %v823_v39, %v842_v54 }
 0x5a3   :  { %v847_v59 = vsel %vm845_vm12, %v846_v56, %v844_v58 }
 0x5a4   :  { %v1181_v60 = vpop.eup %1180  ;;  %v849_v61 = vadd.f32 1e-06, %v847_v59 }
 0x5a5   :  { %v851_v55 = vmul.f32 %v1181_v60, %v848_v20  ;;  %vm856_vm13 = vweird.f32 %v1181_v60 }
 0x5a6   :  { %1182 = vrcp.f32 %v849_v61  ;;  %vm857_vm15 = vmor %vm855_vm14, %vm856_vm13  ;;  %v875_v25 = vand.u32 2147483648, %v849_v61  ;;  %v873_v31 = vand.u32 2147483647, %v849_v61  ;;  %vm869_vm4 = vweird.f32 %v849_v61 }
 0x5a7   :  { %v852_v62 = vsub.f32 1.0, %v851_v55 }
 0x5a8   :  { %v876_v22 = vor.u32 1.1754944e-38, %v875_v25  ;;  %vm874_vm8 = vcmp.eq.f32.partialorder %v873_v31, 8.507059e+37 }
 0x5a9   :  { %v853_v3 = vmul.f32 %v1181_v60, %v852_v62 }
 0x5ab   :  { %v854_v9 = vadd.f32 %v1181_v60, %v853_v3 }
 0x5ac   :  { %v1183_v12 = vpop.eup %1182 }
 0x5ad   :  { %v858_v5 = vsel %vm857_vm15, %v1181_v60, %v854_v9  ;;  %v865_v17 = vmul.f32 %v1183_v12, %v849_v61  ;;  %vm870_vm3 = vweird.f32 %v1183_v12 }
 0x5ae   :  { %v863_v18 = vsel %vm860_vm2, %v862_v13, %v858_v5  ;;  %vm871_vm5 = vmor %vm869_vm4, %vm870_vm3 }
 0x5af   :  { %v881_v24 = vmul.f32 %v879_v4, %v863_v18  ;;  %v866_v29 = vsub.f32 1.0, %v865_v17 }
 0x5b1   :  { %v884_v27 = vadd.f32 %v883_v16, %v881_v24  ;;  %v867_v28 = vmul.f32 %v1183_v12, %v866_v29 }
 0x5b3   :  { %1111 = vmatmul.msk.f32.vlgmr.msrb.gmra.mxu0 %vm31_vm0, %v884_v27  ;;  %v868_v1 = vadd.f32 %v1183_v12, %v867_v28 }
 0x5b5   :  { %v872_v26 = vsel %vm871_vm5, %v1183_v12, %v868_v1 }
 0x5b6   :  { %v877_v38 = vsel %vm874_vm8, %v876_v22, %v872_v26 }
 0x5b7   :  { %v882_v39 = vmul.f32 %v880_v37, %v877_v38 }
 0x5b9   :  { %v885_v30 = vadd.f32 %v883_v16, %v882_v39 }
 0x5bb   :  { %1112 = vmatmul.msk.f32.gmra.mxu0 %vm31_vm0, %v885_v30 }
 0x630   :  { %v922_v7 = vpop.f32.mrf.mxu0 }
 0x631   :  { %v923_v42 = vadd.f32 %v922_v7, %v898_v41 }
 0x633   :  { %v928_v43 = vmax.f32 %v923_v42, 0.0 }
 0x635   :  { %1113 = vmatmul.msk.f32.vlgmr.msra.gmra.mxu1 %vm931_vm9, %v928_v43  ;;  %v1192_v43 = vld [vmem:[%s1685_s4] sm:$0xff]  ;;  %s1256_s4 = smov [#allocation2]  }
 0x636   :  { %s1051_s28 = sshll.u32 %s1256_s4, 4  ;;  %s1052_s28 = int_to_ptr.vmem [resolvable:$true] %s1051_s28 }
 0x638   :  { %v925_v44 = vpop.f32.mrf.mxu0 }
 0x639   :  { %v926_v45 = vadd.f32 %v925_v44, %v898_v41  ;;  %v1037_v44 = vperm.slane %v1192_v43, 6 }
 0x63b   :  { %v929_v46 = vmax.f32 %v926_v45, 0.0 }
 0x63d   :  { %1114 = vmatmul.msk.f32.gmra.mxu1 %vm931_vm9, %v929_v46 }
 0x6b2   :  { %v955_v48 = vpop.f32.mrf.mxu1 }
 0x6b3   :  { %v956_v49 = vadd.f32 %v955_v48, %v930_v47 }
 0x6b5   :  { %v961_v21 = vadd.f32 %v956_v49, %v884_v27 }
 0x6b7   :  { %v963_v50 = vsel %vm31_vm0, %v961_v21, 0.0 }
 0x6b8   :  { %964 = vadd.xlane.f32.xlu0 %v963_v50 }
 0x6ba   :  { %v958_v20 = vpop.f32.mrf.mxu1 }
 0x6bb   :  { %v959_v14 = vadd.f32 %v958_v20, %v930_v47 }
 0x6bd   :  { %v962_v51 = vadd.f32 %v959_v14, %v885_v30 }
 0x6bf   :  { %v966_v52 = vsel %vm31_vm0, %v962_v51, 0.0 }
 0x6c0   :  { %967 = vadd.xlane.f32.xlu2 %v966_v52 }
 0x6d8   :  { %703 = vrot.lane.b32.xlu2 %v1511_v15, %s1251_s15 }
 0x6e0   :  { %711 = vrot.lane.b32.xlu2 %v1528_v35, %s1250_s14 }
 0x72b   :  { %v965_v53 = vpop.xlane.xlu0 %964 }
 0x72c   :  { %v969_v6 = vmul.f32 %v965_v53, %v1568_v0 }
 0x72e   :  { %v1633_v54 = vsub.f32 %v961_v21, %v969_v6 }
 0x730   :  { %v973_v56 = vmul.f32 %v1633_v54, %v1633_v54  ;;  %v1038_v21 = vmul.f32 %v1037_v44, %v1633_v54 }
 0x732   :  { %v975_v57 = vsel %vm31_vm0, %v973_v56, 0.0 }
 0x733   :  { %v968_v58 = vpop.xlane.xlu2 %967  ;;  %976 = vadd.xlane.f32.xlu1 %v975_v57 }
 0x734   :  { %v970_v59 = vmul.f32 %v968_v58, %v1568_v0 }
 0x736   :  { %v1639_v60 = vsub.f32 %v962_v51, %v970_v59  ;;  %v1042_v51 = vperm.slane %v1192_v43, 7 }
 0x738   :  { %v974_v15 = vmul.f32 %v1639_v60, %v1639_v60 }
 0x73a   :  { %v978_v35 = vsel %vm31_vm0, %v974_v15, 0.0 }
 0x73b   :  { %979 = vadd.xlane.f32.xlu0 %v978_v35  ;;  %v1039_v35 = vmul.f32 %v1037_v44, %v1639_v60 }
 0x74c   :  { %705 = vrot.lane.b32.xlu1 %v1453_v32, %s1251_s15 }
 0x74f   :  { %709 = vrot.lane.b32.xlu0 %v1443_v23, %s1250_s14  ;;  %s1064_s14 = sshll.u32 %s1254_s3, 4  ;;  %s1065_s14 = int_to_ptr.vmem [resolvable:$true] %s1064_s14 }
 0x754   :  { %717 = vrot.lane.b32.xlu1 %v1523_v33, %s1252_s16  ;;  %v704_v33 = vpop.permute.xlu2 %703 }
 0x757   :  { %715 = vrot.lane.b32.xlu0 %v1531_v36, %s1252_s16 }
 0x75c   :  { %v712_v37 = vpop.permute.xlu2 %711 }
 0x7a6   :  { %v977_v0 = vpop.xlane.xlu1 %976 }
 0x7a7   :  { %v981_v61 = vmul.f32 0.032258064, %v977_v0 }
 0x7a9   :  { %1184 = vrsqrt.f32 %v981_v61  ;;  %vm990_vm10 = vcmp.eq.f32.partialorder %v981_v61, inf  ;;  %v993_v5 = vand.u32 2147483648, %v981_v61  ;;  %vm992_vm11 = vcmp.eq.f32.partialorder %v981_v61, 0.0 }
 0x7ae   :  { %v980_v55 = vpop.xlane.xlu0 %979 }
 0x7af   :  { %v1185_v62 = vpop.eup %1184  ;;  %v982_v63 = vmul.f32 0.032258064, %v980_v55 }
 0x7b0   :  { %v984_v2 = vmul.f32 %v1185_v62, %v981_v61 }
 0x7b1   :  { %1186 = vrsqrt.f32 %v982_v63  ;;  %vm1002_vm12 = vcmp.eq.f32.partialorder %v982_v63, inf  ;;  %v1005_v31 = vand.u32 2147483648, %v982_v63  ;;  %vm1004_vm13 = vcmp.eq.f32.partialorder %v982_v63, 0.0 }
 0x7b2   :  { %v985_v3 = vmul.f32 %v1185_v62, %v984_v2 }
 0x7b4   :  { %v986_v8 = vmul.f32 0.5, %v985_v3 }
 0x7b6   :  { %v987_v32 = vsub.f32 1.5, %v986_v8 }
 0x7b7   :  { %v1187_v9 = vpop.eup %1186 }
 0x7b8   :  { %v988_v12 = vmul.f32 %v1185_v62, %v987_v32  ;;  %v996_v23 = vmul.f32 %v1187_v9, %v982_v63 }
 0x7ba   :  { %v989_v4 = vmul.f32 %v988_v12, %v981_v61  ;;  %v997_v13 = vmul.f32 %v1187_v9, %v996_v23 }
 0x7bc   :  { %v991_v36 = vsel %vm990_vm10, %v981_v61, %v989_v4  ;;  %v998_v16 = vmul.f32 0.5, %v997_v13 }
 0x7bd   :  { %v994_v17 = vsel %vm992_vm11, %v993_v5, %v991_v36 }
 0x7be   :  { %v1007_v18 = vadd.f32 1e-06, %v994_v17  ;;  %v999_v24 = vsub.f32 1.5, %v998_v16  ;;  %v706_v29 = vpop.permute.xlu1 %705 }
 0x7bf   :  { %v722_v1 = vsel %vm96_vm1, %v1499_v10, %v706_v29  ;;  %v721_v10 = vsel %vm96_vm1, %v1433_v11, %v704_v33 }
 0x7c0   :  { %1188 = vrcp.f32 %v1007_v18  ;;  %v1000_v25 = vmul.f32 %v1187_v9, %v999_v24  ;;  %v725_v30 = vsel %vm723_vm6, %v722_v1, %v712_v37  ;;  %v1020_v46 = vand.u32 2147483648, %v1007_v18 }
 0x7c1   :  { %v710_v27 = vpop.permute.xlu0 %709  ;;  %v1018_v47 = vand.u32 2147483647, %v1007_v18 }
 0x7c2   :  { %v1001_v28 = vmul.f32 %v1000_v25, %v982_v63  ;;  %v724_v41 = vsel %vm723_vm6, %v721_v10, %v710_v27  ;;  %vm1014_vm6 = vweird.f32 %v1007_v18  ;;  %v1021_v50 = vor.u32 1.1754944e-38, %v1020_v46 }
 0x7c4   :  { %v1003_v22 = vsel %vm1002_vm12, %v982_v63, %v1001_v28 }
 0x7c5   :  { %v1006_v26 = vsel %vm1004_vm13, %v1005_v31, %v1003_v22 }
 0x7c6   :  { %v1189_v38 = vpop.eup %1188  ;;  %v1008_v39 = vadd.f32 1e-06, %v1006_v26  ;;  %v718_v40 = vpop.permute.xlu1 %717 }
 0x7c7   :  { %v728_v34 = vsel %vm726_vm7, %v725_v30, %v718_v40  ;;  %v1010_v19 = vmul.f32 %v1189_v38, %v1007_v18  ;;  %vm1015_vm1 = vweird.f32 %v1189_v38 }
 0x7c8   :  { %1190 = vrcp.f32 %v1008_v39  ;;  %730 = vst.msk [vmem:[#allocation4 + $0x8] sm:$0xff] %vm31_vm0, %v728_v34  ;;  %vm1016_vm14 = vmor %vm1014_vm6, %vm1015_vm1  ;;  %v1034_v56 = vand.u32 2147483648, %v1008_v39  ;;  %v1032_v58 = vand.u32 2147483647, %v1008_v39  ;;  %vm1028_vm2 = vweird.f32 %v1008_v39 }
 0x7c9   :  { %v716_v7 = vpop.permute.xlu0 %715  ;;  %v1011_v42 = vsub.f32 1.0, %v1010_v19 }
 0x7ca   :  { %v727_v45 = vsel %vm726_vm7, %v724_v41, %v716_v7  ;;  %vm1019_vm7 = vcmp.eq.f32.partialorder %v1018_v47, 8.507059e+37  ;;  %v1035_v54 = vor.u32 1.1754944e-38, %v1034_v56  ;;  %vm1033_vm4 = vcmp.eq.f32.partialorder %v1032_v58, 8.507059e+37 }
 0x7cb   :  { %729 = vst.msk [vmem:[#allocation4] sm:$0xff] %vm31_vm0, %v727_v45  ;;  %v1012_v11 = vmul.f32 %v1189_v38, %v1011_v42 }
 0x7cc   :  { %1072 = dma.vmem_to_hbm [thread:$0]  %s1065_s14, 256, %s1067_s25, [#allocation5], %s1255_s6, %s1255_s6, %s1251_s15  }
 0x7cd   :  { %v1013_v48 = vadd.f32 %v1189_v38, %v1012_v11 }
 0x7ce   :  { %v1191_v49 = vpop.eup %1190 }
 0x7cf   :  { %v1017_v20 = vsel %vm1016_vm14, %v1189_v38, %v1013_v48  ;;  %v1024_v14 = vmul.f32 %v1191_v49, %v1008_v39  ;;  %vm1029_vm15 = vweird.f32 %v1191_v49 }
 0x7d0   :  { %v1022_v52 = vsel %vm1019_vm7, %v1021_v50, %v1017_v20  ;;  %vm1030_vm3 = vmor %vm1028_vm2, %vm1029_vm15 }
 0x7d1   :  { %v1025_v53 = vsub.f32 1.0, %v1024_v14  ;;  %v1040_v6 = vmul.f32 %v1038_v21, %v1022_v52 }
 0x7d3   :  { %v1026_v57 = vmul.f32 %v1191_v49, %v1025_v53  ;;  %v1043_v59 = vadd.f32 %v1042_v51, %v1040_v6 }
 0x7d5   :  { %v1027_v15 = vadd.f32 %v1191_v49, %v1026_v57  ;;  %1045 = vst.msk [vmem:[#allocation2] sm:$0xff] %vm31_vm0, %v1043_v59 }
 0x7d7   :  { %v1031_v0 = vsel %vm1030_vm3, %v1191_v49, %v1027_v15 }
 0x7d8   :  { %v1036_v61 = vsel %vm1033_vm4, %v1035_v54, %v1031_v0 }
 0x7d9   :  { %v1041_v55 = vmul.f32 %v1039_v35, %v1036_v61 }
 0x7db   :  { %v1044_v62 = vadd.f32 %v1042_v51, %v1041_v55 }
 0x7dd   :  { %1046 = vst.msk [vmem:[#allocation2 + $0x8] sm:$0xff] %vm31_vm0, %v1044_v62 }
 0x7de   :  { %1059 = dma.vmem_to_hbm [thread:$0]  %s1052_s28, 256, %s1054_s7, [#allocation3], %s1255_s6, %s1255_s6, %s1251_s15  }
 0x7df   :  { %1241 = dma.done.wait [#allocation3], 256  }
 0x7e0   :  { %1242 = vsyncadd [#allocation3], 4294967040 }
 0x7e1   :  { %1243 = dma.done.wait [#allocation5], 256  }
 0x7e2   :  { %1244 = vsyncadd [#allocation5], 4294967040 }
 0x7e3   :  { %1081 = vsyncpa [#allocation3], 1 }
 0x7e4   :  { %1082 = vsyncpa [#allocation5], 1 }

</bundles_post_ra>
